<compile_context>
chip_gen: v5e
topology: v5e:2x2
jax: 0.10.0
libtpu: 0.0.40
codegen_flags: <defaults>
</compile_context>

<pallas_src>
import jax
import jax.numpy as jnp
from jax.experimental import pallas as pl
from jax.experimental.pallas import tpu as pltpu

EPS = 1e-5  # PyTorch BatchNorm1d default eps


# ---------------------------------------------------------------------------
# Pass 1: per-channel input moments  (sum_x : (Cin,1),  sum_xxT : (Cin,Cin))
# ---------------------------------------------------------------------------
def _moments_kernel(x_ref, sx_ref, sxx_ref, acc_sx, acc_sxx):
    # x_ref: (1, Cin, TL) tile of the zero-padded input (length on lanes).
    @pl.when((pl.program_id(0) == 0) & (pl.program_id(1) == 0))
    def _init():
        acc_sx[...] = jnp.zeros_like(acc_sx)
        acc_sxx[...] = jnp.zeros_like(acc_sxx)

    x = x_ref[0, :, :]                                       # (Cin, TL)
    acc_sx[...] += jnp.sum(x, axis=-1, keepdims=True)        # cross-lane reduce
    acc_sxx[...] += jnp.dot(x, x.T, preferred_element_type=jnp.float32)

    # Output block index is constant -> stays VMEM-resident, written back once.
    sx_ref[...] = acc_sx[...]
    sxx_ref[...] = acc_sxx[...]


# ---------------------------------------------------------------------------
# Pass 2: folded conv (k=1) + BN affine + ReLU, streamed over lane-dense tiles
# ---------------------------------------------------------------------------
def _conv_affine_relu_kernel(x_ref, w_ref, b_ref, o_ref):
    # x_ref: (1, Cin, TL)  w_ref: (Cout, Cin)  b_ref: (Cout, 1)  o_ref: (1, Cout, TL)
    x = x_ref[0, :, :]                                       # (Cin, TL)
    y = jnp.dot(w_ref[...], x, preferred_element_type=jnp.float32) + b_ref[...]
    o_ref[0, :, :] = jnp.maximum(y, 0.0).astype(o_ref.dtype)


def _choose_tile(lp):
    """Pick a lane tile TL and tile-aligned length Lp_t (TL divides Lp_t)."""
    if lp % 128 == 0:
        for cand in (2048, 1024, 512, 256, 128):
            if lp % cand == 0:
                return cand, lp
    if lp <= 4096:
        return lp, lp                      # full-extent last dim (always legal)
    tl = 1024
    return tl, ((lp + tl - 1) // tl) * tl  # pad length up, slice off at the end


def conv_bn_relu(x, w, b, gamma, beta):
    """x: (N, Cin, L) f32;  w: (Cout, Cin, 1);  b/gamma/beta: (Cout,)."""
    N, Cin, L = x.shape
    Cout = w.shape[0]
    pad = 1
    Lp = L + 2 * pad                       # Conv1d(k=1,s=1,p=1) output length
    TL, Lp_t = _choose_tile(Lp)
    nL = Lp_t // TL

    cparams_seq = pltpu.CompilerParams(
        dimension_semantics=("arbitrary", "arbitrary"),
        vmem_limit_bytes=32 * 1024 * 1024)
    cparams_par = pltpu.CompilerParams(
        dimension_semantics=("parallel", "parallel"),
        vmem_limit_bytes=32 * 1024 * 1024)

    # Single cheap input-side zero pad: conv padding (1,1) plus optional tile tail.
    # Channels stay leading (NCL) -> no transposes; L is lane-dense inside kernels.
    xp = jnp.pad(x.astype(jnp.float32),
                 ((0, 0), (0, 0), (pad, pad + (Lp_t - Lp))))

    # ---- pass 1: tiny input moments, accumulated across the tiled grid ----
    sum_x, sum_xxt = pl.pallas_call(
        _moments_kernel,
        out_shape=(jax.ShapeDtypeStruct((Cin, 1), jnp.float32),
                   jax.ShapeDtypeStruct((Cin, Cin), jnp.float32)),
        grid=(N, nL),
        in_specs=[pl.BlockSpec((1, Cin, TL), lambda n, l: (n, 0, l))],
        out_specs=(pl.BlockSpec((Cin, 1), lambda n, l: (0, 0)),
                   pl.BlockSpec((Cin, Cin), lambda n, l: (0, 0))),
        scratch_shapes=[pltpu.VMEM((Cin, 1), jnp.float32),
                        pltpu.VMEM((Cin, Cin), jnp.float32)],
        compiler_params=cparams_seq,
    )(xp)

    # ---- fold BN(training) batch stats analytically into the pointwise conv ----
    # Conv-pad positions contribute x = 0 but count in M = N*Lp (matches PyTorch
    # pad -> BN); the extra tile-alignment tail is excluded from M.
    M = float(N * Lp)
    W2 = w.reshape(Cout, Cin).astype(jnp.float32)
    mean_x = sum_x[:, 0] / M                                   # (Cin,)
    cov_x = sum_xxt / M - jnp.outer(mean_x, mean_x)            # (Cin, Cin)
    mean_y = W2 @ mean_x + b                                   # (Cout,)
    var_y = jnp.einsum("oi,ij,oj->o", W2, cov_x, W2)           # biased var, as in BN
    scale = gamma * jax.lax.rsqrt(var_y + EPS)
    w_eff = W2 * scale[:, None]                                # (Cout, Cin)
    b_eff = (scale * (b - mean_y) + beta).reshape(Cout, 1)     # (Cout, 1)

    # ---- pass 2: streaming folded conv + ReLU (fully parallel grid) ----
    out = pl.pallas_call(
        _conv_affine_relu_kernel,
        out_shape=jax.ShapeDtypeStruct((N, Cout, Lp_t), jnp.float32),
        grid=(N, nL),
        in_specs=[pl.BlockSpec((1, Cin, TL), lambda n, l: (n, 0, l)),
                  pl.BlockSpec((Cout, Cin), lambda n, l: (0, 0)),   # resident params
                  pl.BlockSpec((Cout, 1), lambda n, l: (0, 0))],    # resident params
        out_specs=pl.BlockSpec((1, Cout, TL), lambda n, l: (n, 0, l)),
        compiler_params=cparams_par,
    )(xp, w_eff, b_eff)

    return out if Lp_t == Lp else out[:, :, :Lp]


def _reference(x, w, b, gamma, beta):
    """Pure-JAX reference of Conv1d(k=1,s=1,p=1) -> BN1d(train) -> ReLU."""
    pad = 1
    xp = jnp.pad(x, ((0, 0), (0, 0), (pad, pad)))               # (N, Cin, Lp)
    y = jnp.einsum("ncl,oc->nol", xp, w.reshape(w.shape[0], -1)) \
        + b[None, :, None]
    mean = jnp.mean(y, axis=(0, 2), keepdims=True)
    var = jnp.mean(jnp.square(y - mean), axis=(0, 2), keepdims=True)
    y_hat = (y - mean) / jnp.sqrt(var + EPS)
    out = y_hat * gamma[None, :, None] + beta[None, :, None]
    return jnp.maximum(out, 0.0)


if __name__ == "__main__":
    key = jax.random.PRNGKey(0)
    k_x, k_w, k_b, k_g, k_bt = jax.random.split(key, 5)

    N, Cin, Cout, L = 2, 4, 8, 16
    x = jax.random.normal(k_x, (N, Cin, L), dtype=jnp.float32)

    # Parameters matching nn.Conv1d(Cin, Cout, 1) + nn.BatchNorm1d(Cout).
    w = jax.random.normal(k_w, (Cout, Cin, 1), dtype=jnp.float32) * 0.5
    b = jax.random.normal(k_b, (Cout,), dtype=jnp.float32) * 0.1
    gamma = 1.0 + 0.1 * jax.random.normal(k_g, (Cout,), dtype=jnp.float32)
    beta = 0.1 * jax.random.normal(k_bt, (Cout,), dtype=jnp.float32)

    fn = jax.jit(conv_bn_relu)
    out = jax.block_until_ready(fn(x, w, b, gamma, beta))

    ref = _reference(x, w, b, gamma, beta)
    assert out.shape == (N, Cout, L + 2), out.shape
    err = float(jnp.max(jnp.abs(out - ref)))
    assert err < 1e-4, err
    print("KERNEL_OK")
</pallas_src>

<mosaic_0001>
module attributes {stable_mosaic.version = 11 : i64} {
  func.func @_moments_kernel(%arg0: i32, %arg1: i32, %arg2: memref<1x4x18xf32, #tpu.memory_space<vmem>>, %arg3: memref<4x1xf32, #tpu.memory_space<vmem>>, %arg4: memref<4x4xf32, #tpu.memory_space<vmem>>, %arg5: memref<4x1xf32, #tpu.memory_space<vmem>>, %arg6: memref<4x4xf32, #tpu.memory_space<vmem>>) attributes {dimension_semantics = [#tpu.dimension_semantics<arbitrary>, #tpu.dimension_semantics<arbitrary>], iteration_bounds = array<i64: 2, 1>, scalar_prefetch = 0 : i64, scratch_operands = 2 : i64, tpu.core_type = #tpu.core_type<tc>, window_params = [{transform_indices = @transform_0, window_bounds = array<i64: 1, 4, 18>}, {pipeline_mode = #tpu.pipeline_mode<synchronous>, transform_indices = @transform_1, window_bounds = array<i64: 4, 1>}, {pipeline_mode = #tpu.pipeline_mode<synchronous>, transform_indices = @transform_2, window_bounds = array<i64: 4, 4>}]} {
    %c0_i32 = arith.constant 0 : i32
    %0 = arith.cmpi eq, %arg0, %c0_i32 : i32
    %c0_i32_0 = arith.constant 0 : i32
    %1 = arith.cmpi eq, %arg1, %c0_i32_0 : i32
    %2 = arith.andi %0, %1 : i1
    %3 = arith.extui %2 : i1 to i32
    %c0_i32_1 = arith.constant 0 : i32
    %4 = arith.cmpi ne, %3, %c0_i32_1 : i32
    scf.if %4 {
      %cst_21 = arith.constant 0.000000e+00 : f32
      %21 = vector.broadcast %cst_21 : f32 to vector<4x1xf32>
      %c0_22 = arith.constant 0 : index
      %c0_23 = arith.constant 0 : index
      %22 = vector.load %arg5[%c0_22, %c0_23] : memref<4x1xf32, #tpu.memory_space<vmem>>, vector<4x1xf32>
      tpu.vector_store %arg5[%c0_22, %c0_23], %21 {strides = array<i32>} : memref<4x1xf32, #tpu.memory_space<vmem>>, vector<4x1xf32>,
      %cst_24 = arith.constant 0.000000e+00 : f32
      %23 = vector.broadcast %cst_24 : f32 to vector<4x4xf32>
      %c0_25 = arith.constant 0 : index
      %c0_26 = arith.constant 0 : index
      %24 = vector.load %arg6[%c0_25, %c0_26] : memref<4x4xf32, #tpu.memory_space<vmem>>, vector<4x4xf32>
      tpu.vector_store %arg6[%c0_25, %c0_26], %23 {strides = array<i32>} : memref<4x4xf32, #tpu.memory_space<vmem>>, vector<4x4xf32>,
    } else {
    }
    %c0 = arith.constant 0 : index
    %c0_2 = arith.constant 0 : index
    %c0_3 = arith.constant 0 : index
    %5 = vector.load %arg2[%c0, %c0_2, %c0_3] : memref<1x4x18xf32, #tpu.memory_space<vmem>>, vector<1x4x18xf32>
    %6 = vector.shape_cast %5 : vector<1x4x18xf32> to vector<4x18xf32>
    %c0_4 = arith.constant 0 : index
    %c0_5 = arith.constant 0 : index
    %7 = vector.load %arg5[%c0_4, %c0_5] : memref<4x1xf32, #tpu.memory_space<vmem>>, vector<4x1xf32>
    %cst = arith.constant dense<0.000000e+00> : vector<4xf32>
    %8 = vector.multi_reduction <add>, %6, %cst [1] : vector<4x18xf32> to vector<4xf32>
    %9 = vector.shape_cast %8 : vector<4xf32> to vector<4x1xf32>
    %10 = arith.addf %7, %9 : vector<4x1xf32>
    %c0_6 = arith.constant 0 : index
    %c0_7 = arith.constant 0 : index
    %11 = vector.load %arg5[%c0_6, %c0_7] : memref<4x1xf32, #tpu.memory_space<vmem>>, vector<4x1xf32>
    tpu.vector_store %arg5[%c0_6, %c0_7], %10 {strides = array<i32>} : memref<4x1xf32, #tpu.memory_space<vmem>>, vector<4x1xf32>,
    %c0_8 = arith.constant 0 : index
    %c0_9 = arith.constant 0 : index
    %12 = vector.load %arg6[%c0_8, %c0_9] : memref<4x4xf32, #tpu.memory_space<vmem>>, vector<4x4xf32>
    %13 = tpu.transpose %6, [1, 0] : vector<4x18xf32> -> vector<18x4xf32>
    %cst_10 = arith.constant dense<0.000000e+00> : vector<4x4xf32>
    %14 = tpu.matmul %6, %13, %cst_10 {dimension_numbers = #tpu.dot_dimension_numbers<[1], [0], [0], [1], [0, 0, 1, 1], [], []>} : vector<4x18xf32>, vector<18x4xf32>, vector<4x4xf32> -> vector<4x4xf32>
    %15 = arith.addf %12, %14 : vector<4x4xf32>
    %c0_11 = arith.constant 0 : index
    %c0_12 = arith.constant 0 : index
    %16 = vector.load %arg6[%c0_11, %c0_12] : memref<4x4xf32, #tpu.memory_space<vmem>>, vector<4x4xf32>
    tpu.vector_store %arg6[%c0_11, %c0_12], %15 {strides = array<i32>} : memref<4x4xf32, #tpu.memory_space<vmem>>, vector<4x4xf32>,
    %c0_13 = arith.constant 0 : index
    %c0_14 = arith.constant 0 : index
    %17 = vector.load %arg5[%c0_13, %c0_14] : memref<4x1xf32, #tpu.memory_space<vmem>>, vector<4x1xf32>
    %c0_15 = arith.constant 0 : index
    %c0_16 = arith.constant 0 : index
    %18 = vector.load %arg3[%c0_15, %c0_16] : memref<4x1xf32, #tpu.memory_space<vmem>>, vector<4x1xf32>
    tpu.vector_store %arg3[%c0_15, %c0_16], %17 {strides = array<i32>} : memref<4x1xf32, #tpu.memory_space<vmem>>, vector<4x1xf32>,
    %c0_17 = arith.constant 0 : index
    %c0_18 = arith.constant 0 : index
    %19 = vector.load %arg6[%c0_17, %c0_18] : memref<4x4xf32, #tpu.memory_space<vmem>>, vector<4x4xf32>
    %c0_19 = arith.constant 0 : index
    %c0_20 = arith.constant 0 : index
    %20 = vector.load %arg4[%c0_19, %c0_20] : memref<4x4xf32, #tpu.memory_space<vmem>>, vector<4x4xf32>
    tpu.vector_store %arg4[%c0_19, %c0_20], %19 {strides = array<i32>} : memref<4x4xf32, #tpu.memory_space<vmem>>, vector<4x4xf32>,
    return
  }
  func.func @transform_0(%arg0: i32, %arg1: i32) -> (i32, i32, i32) {
    %c0_i32 = arith.constant 0 : i32
    %c0_i32_0 = arith.constant 0 : i32
    return %arg0, %c0_i32, %arg1 : i32, i32, i32
  }
  func.func @transform_1(%arg0: i32, %arg1: i32) -> (i32, i32) {
    %c0_i32 = arith.constant 0 : i32
    %c0_i32_0 = arith.constant 0 : i32
    %c0_i32_1 = arith.constant 0 : i32
    return %c0_i32, %c0_i32_0 : i32, i32
  }
  func.func @transform_2(%arg0: i32, %arg1: i32) -> (i32, i32) {
    %c0_i32 = arith.constant 0 : i32
    %c0_i32_0 = arith.constant 0 : i32
    %c0_i32_1 = arith.constant 0 : i32
    return %c0_i32, %c0_i32_0 : i32, i32
  }
}

module attributes {stable_mosaic.version = 11 : i64} {
  func.func @_conv_affine_relu_kernel(%arg0: i32, %arg1: i32, %arg2: memref<1x4x18xf32, #tpu.memory_space<vmem>>, %arg3: memref<8x4xf32, #tpu.memory_space<vmem>>, %arg4: memref<8x1xf32, #tpu.memory_space<vmem>>, %arg5: memref<1x8x18xf32, #tpu.memory_space<vmem>>) attributes {dimension_semantics = [#tpu.dimension_semantics<parallel>, #tpu.dimension_semantics<parallel>], iteration_bounds = array<i64: 2, 1>, scalar_prefetch = 0 : i64, scratch_operands = 0 : i64, tpu.core_type = #tpu.core_type<tc>, window_params = [{transform_indices = @transform_0, window_bounds = array<i64: 1, 4, 18>}, {pipeline_mode = #tpu.pipeline_mode<synchronous>, transform_indices = @transform_1, window_bounds = array<i64: 8, 4>}, {pipeline_mode = #tpu.pipeline_mode<synchronous>, transform_indices = @transform_2, window_bounds = array<i64: 8, 1>}, {transform_indices = @transform_3, window_bounds = array<i64: 1, 8, 18>}]} {
    %c0 = arith.constant 0 : index
    %c0_0 = arith.constant 0 : index
    %c0_1 = arith.constant 0 : index
    %0 = vector.load %arg2[%c0, %c0_0, %c0_1] : memref<1x4x18xf32, #tpu.memory_space<vmem>>, vector<1x4x18xf32>
    %1 = vector.shape_cast %0 : vector<1x4x18xf32> to vector<4x18xf32>
    %c0_2 = arith.constant 0 : index
    %c0_3 = arith.constant 0 : index
    %2 = vector.load %arg3[%c0_2, %c0_3] : memref<8x4xf32, #tpu.memory_space<vmem>>, vector<8x4xf32>
    %cst = arith.constant dense<0.000000e+00> : vector<8x18xf32>
    %3 = tpu.matmul %2, %1, %cst {dimension_numbers = #tpu.dot_dimension_numbers<[1], [0], [0], [1], [0, 0, 1, 1], [], []>} : vector<8x4xf32>, vector<4x18xf32>, vector<8x18xf32> -> vector<8x18xf32>
    %c0_4 = arith.constant 0 : index
    %c0_5 = arith.constant 0 : index
    %4 = vector.load %arg4[%c0_4, %c0_5] : memref<8x1xf32, #tpu.memory_space<vmem>>, vector<8x1xf32>
    %5 = vector.broadcast %4 : vector<8x1xf32> to vector<8x18xf32>
    %6 = arith.addf %3, %5 : vector<8x18xf32>
    %cst_6 = arith.constant 0.000000e+00 : f32
    %7 = vector.broadcast %cst_6 : f32 to vector<8x18xf32>
    %8 = arith.maximumf %6, %7 : vector<8x18xf32>
    %c0_7 = arith.constant 0 : index
    %c0_8 = arith.constant 0 : index
    %c0_9 = arith.constant 0 : index
    %9 = vector.load %arg5[%c0_7, %c0_8, %c0_9] : memref<1x8x18xf32, #tpu.memory_space<vmem>>, vector<1x8x18xf32>
    %10 = vector.shape_cast %9 : vector<1x8x18xf32> to vector<8x18xf32>
    %11 = vector.shape_cast %8 : vector<8x18xf32> to vector<1x8x18xf32>
    tpu.vector_store %arg5[%c0_7, %c0_8, %c0_9], %11 {strides = array<i32>} : memref<1x8x18xf32, #tpu.memory_space<vmem>>, vector<1x8x18xf32>,
    return
  }
  func.func @transform_0(%arg0: i32, %arg1: i32) -> (i32, i32, i32) {
    %c0_i32 = arith.constant 0 : i32
    %c0_i32_0 = arith.constant 0 : i32
    return %arg0, %c0_i32, %arg1 : i32, i32, i32
  }
  func.func @transform_1(%arg0: i32, %arg1: i32) -> (i32, i32) {
    %c0_i32 = arith.constant 0 : i32
    %c0_i32_0 = arith.constant 0 : i32
    %c0_i32_1 = arith.constant 0 : i32
    return %c0_i32, %c0_i32_0 : i32, i32
  }
  func.func @transform_2(%arg0: i32, %arg1: i32) -> (i32, i32) {
    %c0_i32 = arith.constant 0 : i32
    %c0_i32_0 = arith.constant 0 : i32
    %c0_i32_1 = arith.constant 0 : i32
    return %c0_i32, %c0_i32_0 : i32, i32
  }
  func.func @transform_3(%arg0: i32, %arg1: i32) -> (i32, i32, i32) {
    %c0_i32 = arith.constant 0 : i32
    %c0_i32_0 = arith.constant 0 : i32
    return %arg0, %c0_i32, %arg1 : i32, i32, i32
  }
}

</mosaic_0001>

<bundles_post_ra>
// kernel: conv_bn_relu.3
= control target key start
LH: loop header
LB: loop body
LE: loop exit
PB: predicated region body
PF: predicated region fallthrough
CT: control target
= control target key end

     0   :  { %8 = vsyncpa [#allocation3], 0  ;;  %s592_s0 = inlined_call_operand.vmem [shape: f32[2,4,18], index: 0, kind: input, shape index: {}]   ;;  %s593_s1 = inlined_call_operand.vmem [shape: f32[8,4], index: 1, kind: input, shape index: {}]   ;;  %s594_s2 = inlined_call_operand.vmem [shape: f32[8,1], index: 2, kind: input, shape index: {}]   ;;  %s595_s3 = inlined_call_operand.hbm [shape: f32[2,8,18], index: 3, kind: output, shape index: {}]  }
   0x1   :  { %10 = vsyncpa [#allocation3 + $0x1], 0  ;;  %s489_s12 = smov 0   ;;  %s491_s13 = smov 0  }
   0x2   :  { %s493_s14 = smov 0   ;;  %s495_s15 = smov 0  }
   0x3   :  { %s497_s16 = smov 0   ;;  %s499_s17 = smov 0  }
   0x4 LB: > { %s318_s18 = sadd.s32 4294967295, %s466_s17   ;;  %s319_s19 = sadd.s32 4294967294, %s466_s17   ;;  %s466_s17 = sphi %s499_s17, %s16_s17   ;;  %s462_s16 = sphi %s497_s16, %s602_s16   ;;  %s458_s15 = sphi %s495_s15, %s601_s15   ;;  %s454_s14 = sphi %s493_s14, %s600_s14   ;;  %s450_s13 = sphi %s491_s13, %s599_s13   ;;  %s446_s12 = sphi %s489_s12, %s598_s12  }
   0x5   : > { %s28_s20 = sadd.s32 1, %s462_s16  ;;  %s107_s21 = sadd.s32 1, %s454_s14 }
   0x6   : > { %p30_p0 = scmp.ge.s32.totalorder %s28_s20, 2  ;;  %p117_p1 = scmp.ne.s32.totalorder %s454_s14, %s450_s13 }
   0x7   : > { %p118_p2 = scmp.eq.s32.totalorder %s318_s18, 1  ;;  %p123_p3 = scmp.ne.s32.totalorder %s450_s13, %s446_s12 }
   0x8   : > { %s604_s20 = smov (%p30_p0, %s28_s20), 0  ;;  %p124_p5 = scmp.eq.s32.totalorder %s319_s19, 1 }
   0x9   : > { %p529_p4 = por %p118_p2, %p117_p1  ;;  %s102_s23 = ssub.s32 %s462_s16, %s604_s20 }
   0xa   : > { %p322_p6 = scmp.ge.s32.totalorder %s466_s17, 1  ;;  %p105_p7 = scmp.eq.s32.totalorder %s102_s23, 0 }
   0xb   : > { %p536_p8 = por %p124_p5, %p123_p3  ;;  %p158_p9 = scmp.lt.s32.totalorder %s466_s17, 3 }
   0xc   : > { %s542_s25 = scalar_select %p105_p7, %s454_s14, %s107_s21  }
   0xd   : > { %p159_p10 = pnand %p322_p6, %p158_p9 }
   0xe   : > { %p184_p11 = scmp.lt.s32.totalorder (!%p159_p10), %s458_s15, 1  ;;  %s181_s8 = sand.u32 (!%p159_p10), 1, %s450_s13  }
   0xf   : > { %162 = sbr.rel (%p159_p10) target bundleno = 159 (0x9f), region = 32  ;;  %s323_s9 = sshll.u32 (!%p159_p10), %s181_s8, 3 }
  0x10   : > { %s328_s10 = sshll.u32 (!%p159_p10), %s458_s15, 3  ;;  %s183_s21 = scalar_lea.vmem (!%p159_p10), [#allocation2], %s323_s9 }
  0x11   : > { %s242_s19 = scalar_lea.hbm (!%p159_p10), %s595_s3, %s328_s10  ;;  %s244_s23 = sshll.u32 (!%p159_p10), %s183_s21, 4  ;;  %s245_s23 = int_to_ptr.vmem [resolvable:$true] %s244_s23 }
  0x12   : > { %s246_s26 = sshll.u32 (!%p159_p10), %s242_s19, 4  ;;  %s231_s27 = scalar_lea.sflag (!%p159_p10), [#allocation3], %s181_s8  ;;  %s247_s26 = int_to_ptr.hbm [resolvable:$true] %s246_s26 }
  0x13   : > { %s408_s4 = scalar_lea.hbm (!%p159_p10), %s595_s3, 16 }
  0x14   : > { %v193_v0 = vld [vmem:[%s594_s2] sm:$0xff]  ;;  %v468_v1 = vmov 0   ;;  %s185_s28 = scalar_select %p184_p11, %s458_s15, 1  ;;  %vm203_vm0 = vcmask 1043456   ;;  %vm199_vm1 = vcmask 31744   ;;  %vm228_vm2 = vcmask 146432  }
  0x15   : > { %387 = vset.pattern.permute.xlu0 %v468_v1  ;;  %v192_v2 = vld [vmem:[%s593_s1] sm:$0xff] }
  0x16   : > { %196 = vperm.xlu0 %387, %v193_v0   ;;  %s324_s29 = sshll.u32 %s185_s28, 2  ;;  %s402_s28 = sshra.s32 %s247_s26, 4  ;;  %s403_s28 = int_to_ptr.hbm [resolvable:$true] %s402_s28 }
  0x17   : > { %s190_s5 = scalar_lea.vmem %s592_s0, %s324_s29  ;;  %s404_s15 = scalar_lea.hbm %s403_s28, 8 }
  0x18   : > { %v191_v3 = vld [vmem:[%s190_s5] sm:$0xf]  ;;  %p405_p12 = scmp.ne.s32.totalorder %s403_s28, %s404_s15  ;;  %p409_p1 = scmp.lt.s32.totalorder %s403_s28, %s595_s3 }
  0x19   : > { %325 = vmatpush.msk.msra.mxu0 %vm203_vm0, %v191_v3  ;;  %p410_p2 = scmp.lt.s32.totalorder %s408_s4, %s404_s15 }
  0x1a   : > { %326 = vmatmul.msk.f32.vlgmr.msra.gmra.mxu0 %vm199_vm1, %v192_v2  ;;  %p406_p13 = pnand %p405_p12, %p529_p4 }
  0x1b   : > { %p411_p3 = por %p410_p2, %p409_p1 }
  0x1c   : > { %p407_p0 = pneg %p406_p13 }
  0x1e   : > { %p412_p5 = pnand %p411_p3, %p407_p0 }
  0x88   : > { %v197_v4 = vpop.permute.xlu0 %196 }
  0x97   : > { %v224_v5 = vpop.f32.mrf.mxu0 }
  0x98   : > { %v225_v6 = vadd.f32 %v224_v5, %v197_v4 }
  0x9a   : > { %v227_v7 = vmax.f32 %v225_v6, 0.0 }
  0x9c   : > { %229 = vst.msk [vmem:[%s183_s21] sm:$0xff] %vm228_vm2, %v227_v7 }
  0x9d   : > { %415 = shalt.err (!%p412_p5)
}
  0x9e   : > { %331 = dma.vmem_to_hbm [thread:$0]  (%p529_p4), %s245_s23, 128, %s247_s26, %s231_s27  }
  0x9f PF: > { %p337_p6 = scmp.ge.s32.totalorder %s466_s17, 2  ;;  %s258_s7 = sand.u32 1, %s446_s12  }
  0xa0   : > { %s259_s8 = scalar_lea.sflag [#allocation3], %s258_s7 }
  0xa1   : > { %p334_p7 = pnand %p337_p6, %p536_p8 }
  0xa3   : > { %p335_p9 = pneg %p334_p7 }
  0xa5   : > { %441 = dma.done.wait (%p335_p9), %s259_s8, 128  }
  0xa6   : > { %443 = vsyncadd (%p335_p9), %s259_s8, 4294967168  ;;  %s16_s17 = sadd.s32 1, %s466_s17   ;;  %s598_s12 = smov %s450_s13 }
  0xa7   : > { %p13_p10 = scmp.ge.s32.totalorder %s16_s17, 4   ;;  %s599_s13 = smov %s454_s14 }
  0xa8   : > { %s600_s14 = smov %s542_s25  ;;  %s601_s15 = smov %s462_s16 }
  0xa9   : > { %s602_s16 = smov %s604_s20  ;;  %15 = sbr.rel (!%p13_p10) target bundleno = 4 (0x4), region = 67 }
  0xae   :  { %265 = vsyncpa [#allocation3], 1 }
  0xaf   :  { %267 = vsyncpa [#allocation3 + $0x1], 1 }

// kernel: conv_bn_relu.2
= control target key start
LH: loop header
LB: loop body
LE: loop exit
PB: predicated region body
PF: predicated region fallthrough
CT: control target
= control target key end

     0   :  { %s319_s9 = smov 0   ;;  %s321_s10 = smov 0   ;;  %s355_s0 = inlined_call_operand.vmem [shape: f32[2,4,18], index: 0, kind: input, shape index: {}]   ;;  %s356_s1 = inlined_call_operand.vmem [shape: f32[4,1], index: 1, kind: output, shape index: {0}]   ;;  %s357_s2 = inlined_call_operand.vmem [shape: f32[4,4], index: 2, kind: output, shape index: {1}]  }
   0x1   :  { %s323_s11 = smov 0  }
   0x2 LB: > { %s25_s12 = sadd.s32 1, %s297_s10  ;;  %p246_p0 = scmp.ge.s32.totalorder %s301_s11, 1  ;;  %s301_s11 = sphi %s323_s11, %s13_s11   ;;  %s297_s10 = sphi %s321_s10, %s359_s10   ;;  %s293_s9 = sphi %s319_s9, %s358_s9  }
   0x3   : > { %p27_p1 = scmp.ge.s32.totalorder %s25_s12, 2  ;;  %p121_p2 = scmp.lt.s32.totalorder %s301_s11, 3 }
   0x5   : > { %s361_s12 = smov (%p27_p1, %s25_s12), 0  ;;  %p122_p3 = pnand %p246_p0, %p121_p2 }
   0x6   : > { %p140_p4 = scmp.lt.s32.totalorder (!%p122_p3), %s293_s9, 1  ;;  %p147_p5 = scmp.eq.s32.totalorder (!%p122_p3), %s293_s9, 0 }
   0x7   : > { %125 = sbr.rel (%p122_p3) target bundleno = 158 (0x9e), region = 24 }
   0xc   : > { %s363_s9 = smov (!%p140_p4, %s293_s9), 1  ;;  %152 = sbr.rel (!%p147_p5) target bundleno = 17 (0x11), region = 28  ;;  %vm153_vm0 = vcmask (%p147_p5), 3072   ;;  %vm155_vm1 = vcmask (%p147_p5), 27648   ;;  %v303_v0 = vmov (%p147_p5), 0.0  }
   0xd   : > { %s247_s13 = sshll.u32 %s363_s9, 2  ;;  %154 = vst.msk [vmem:[#allocation2] sm:$0xf] (%p147_p5), %vm153_vm0, %v303_v0 }
   0xe   : > { %s146_s16 = scalar_lea.vmem %s355_s0, %s247_s13  ;;  %156 = vst.msk [vmem:[#allocation3] sm:$0xf] (%p147_p5), %vm155_vm1, %v303_v0 }
  0x11 PF: > { %v157_v1 = vld [vmem:[%s146_s16] sm:$0xf]  ;;  %vm167_vm2 = vcmask 146432   ;;  %vm159_vm3 = vcmask 142336   ;;  %vm164_vm4 = vcmask 3072   ;;  %vm192_vm5 = vcmask 27648  }
  0x12   : > { %249 = vmatpush.xpose.msk.msra.mxu0 %vm167_vm2, %v157_v1  ;;  %v160_v2 = vsel %vm159_vm3, %v157_v1, 0.0 }
  0x13   : > { %161 = vadd.xlane.f32.xlu0 %v160_v2 }
  0x14   : > { %v158_v3 = vld [vmem:[#allocation2] sm:$0xf] }
  0x15   : > { %250 = vmatmul.msk.f32.vlgmr.msra.gmra.mxu0 %vm167_vm2, %v157_v1  ;;  %v166_v7 = vld [vmem:[#allocation3] sm:$0xf] }
  0x86   : > { %v162_v4 = vpop.xlane.xlu0 %161 }
  0x87   : > { %v163_v5 = vadd.f32 %v162_v4, %v158_v3 }
  0x89   : > { %165 = vst.msk [vmem:[#allocation2] sm:$0xf] %vm164_vm4, %v163_v5 }
  0x90   : > { %v194_v6 = vld [vmem:[#allocation2] sm:$0xf] }
  0x91   : > { %195 = vst.msk [vmem:[%s356_s1] sm:$0xf] %vm164_vm4, %v194_v6 }
  0x92   : > { %v188_v8 = vpop.f32.mrf.mxu0 }
  0x93   : > { %v191_v9 = vadd.f32 %v188_v8, %v166_v7 }
  0x95   : > { %193 = vst.msk [vmem:[#allocation3] sm:$0xf] %vm192_vm5, %v191_v9 }
  0x9c   : > { %v196_v10 = vld [vmem:[#allocation3] sm:$0xf] }
  0x9d   : > { %197 = vst.msk [vmem:[%s357_s2] sm:$0xf] %vm192_vm5, %v196_v10 }
  0x9e PF: > { %s13_s11 = sadd.s32 1, %s301_s11   ;;  %s358_s9 = smov %s297_s10 }
  0x9f   : > { %p10_p6 = scmp.ge.s32.totalorder %s13_s11, 4   ;;  %s359_s10 = smov %s361_s12 }
  0xa1   :  { %12 = sbr.rel (!%p10_p6) target bundleno = 2 (0x2), region = 62 }

</bundles_post_ra>
